<compile_context>
chip_gen: v6e
topology: v6e:2x2x1
jax: 0.10.0
libtpu: 0.0.40
codegen_flags: <defaults>
</compile_context>

<pallas_src>
import functools
import math

import jax
import jax.numpy as jnp
from jax.experimental import pallas as pl
from jax.experimental.pallas import tpu as pltpu

LANES = 128
SUBLANES = 8
ALIGN = SUBLANES * LANES  # 1024-element zero-copy / alignment unit


def _cdiv(a, b):
    return -(-a // b)


def _round_up(x, m):
    return ((x + m - 1) // m) * m


def _chip_config():
    """Per-chip defaults: shard count, tile rows, explicit VMEM limit."""
    kind = ""
    try:
        dev = jax.devices()[0]
        if getattr(dev, "platform", "") == "tpu":
            kind = dev.device_kind.lower()
    except Exception:
        pass
    if "v7" in kind or "7x" in kind:
        # 2 TensorCores, 3.2 TB/s HBM -> big tiles; 64 MiB physical VMEM.
        return dict(nshards=2, rows_per_tile=8192, vmem_limit=32 * 1024 * 1024)
    if "v6" in kind:
        # 1 TC; 2 MiB/input/buffer double-buffered fits default scoped VMEM.
        return dict(nshards=1, rows_per_tile=4096, vmem_limit=None)
    # v5e / unknown: conservative, fits the 16 MiB default scoped VMEM.
    return dict(nshards=1, rows_per_tile=2048, vmem_limit=None)


def _asym_mse_kernel(pred_ref, tgt_ref, out_ref, *,
                     low_thr, high_thr, w_low, w_high,
                     block_rows, acc_rows, chunk_rows, n_chunks, unroll,
                     rows_valid, tiles_per_shard, needs_mask):
    p = pl.program_id(0)   # partial-sum shard ("parallel")
    i = pl.program_id(1)   # tile within shard ("arbitrary", accumulated)

    @pl.when(i == 0)
    def _():
        out_ref[...] = jnp.zeros_like(out_ref)

    def weighted_sq(x, t):
        x = x.astype(jnp.float32)
        t = t.astype(jnp.float32)
        # Torch order: the high-threshold assignment happens last -> wins on overlap.
        w = jnp.where(t < low_thr, jnp.float32(w_low), jnp.float32(1.0))
        w = jnp.where(t >= high_thr, jnp.float32(w_high), w)
        d = x - t
        return w * d * d

    def accumulate_unmasked():
        if n_chunks == 1:
            v = weighted_sq(pred_ref[...], tgt_ref[...])
            out_ref[...] += v.reshape(block_rows // acc_rows, acc_rows, LANES).sum(axis=0)
        else:
            def body(j, acc):
                r0 = pl.multiple_of(j * chunk_rows, chunk_rows)
                v = weighted_sq(pred_ref[pl.ds(r0, chunk_rows), :],
                                tgt_ref[pl.ds(r0, chunk_rows), :])
                return acc + v.reshape(chunk_rows // acc_rows, acc_rows, LANES).sum(axis=0)
            acc = jax.lax.fori_loop(0, n_chunks, body,
                                    jnp.zeros((acc_rows, LANES), jnp.float32),
                                    unroll=unroll)
            out_ref[...] += acc

    if not needs_mask:
        # Slab tiles evenly and no clamped tiles exist: no mask code at all.
        accumulate_unmasked()
    else:
        row0 = (p * tiles_per_shard + i) * block_rows
        is_tail = row0 + block_rows > rows_valid

        @pl.when(jnp.logical_not(is_tail))
        def _():
            accumulate_unmasked()

        @pl.when(is_tail)
        def _():
            # Cold path: partial last tile or clamped duplicate tile.
            v = weighted_sq(pred_ref[...], tgt_ref[...])
            ridx = row0 + jax.lax.broadcasted_iota(jnp.int32, (block_rows, LANES), 0)
            # Select (not multiply) so NaN/Inf garbage past the end is dropped.
            v = jnp.where(ridx < rows_valid, v, jnp.float32(0.0))
            out_ref[...] += v.reshape(block_rows // acc_rows, acc_rows, LANES).sum(axis=0)


def _weighted_sse_pallas(p2, t2, low_thr, high_thr, w_low, w_high, cfg):
    """Sum of w*(pred-target)^2 over a lane-dense (rows, 128) slab."""
    rows = p2.shape[0]

    block_rows = min(int(cfg["rows_per_tile"]), rows)
    total_tiles = _cdiv(rows, block_rows)
    nshards = max(1, min(int(cfg["nshards"]), total_tiles))
    tiles_per_shard = _cdiv(total_tiles, nshards)

    acc_rows = math.gcd(block_rows, 64)     # up to 8 independent accumulation chains
    chunk_rows = math.gcd(block_rows, 512)  # bound vreg live ranges per inner chunk
    n_chunks = block_rows // chunk_rows
    unroll = True if n_chunks <= 16 else 8

    has_clamped = nshards * tiles_per_shard > total_tiles
    has_partial = rows % block_rows != 0
    needs_mask = has_clamped or has_partial

    if has_clamped:
        def in_map(p, i):
            # Fully out-of-range tail tiles are clamped onto the last real
            # block; the in-kernel row mask zeroes their contribution.
            return (jnp.minimum(p * tiles_per_shard + i, total_tiles - 1), 0)
    else:
        def in_map(p, i):
            return (p * tiles_per_shard + i, 0)

    kernel = functools.partial(
        _asym_mse_kernel,
        low_thr=float(low_thr), high_thr=float(high_thr),
        w_low=float(w_low), w_high=float(w_high),
        block_rows=int(block_rows), acc_rows=int(acc_rows),
        chunk_rows=int(chunk_rows), n_chunks=int(n_chunks), unroll=unroll,
        rows_valid=int(rows), tiles_per_shard=int(tiles_per_shard),
        needs_mask=bool(needs_mask),
    )

    cp = dict(dimension_semantics=("parallel", "arbitrary"))
    if cfg.get("vmem_limit"):
        cp["vmem_limit_bytes"] = int(cfg["vmem_limit"])

    partials = pl.pallas_call(
        kernel,
        out_shape=jax.ShapeDtypeStruct((nshards * acc_rows, LANES), jnp.float32),
        grid_spec=pltpu.PrefetchScalarGridSpec(
            num_scalar_prefetch=0,
            grid=(nshards, tiles_per_shard),
            in_specs=[
                pl.BlockSpec((block_rows, LANES), in_map),
                pl.BlockSpec((block_rows, LANES), in_map),
            ],
            # Output block is resident across the "arbitrary" i axis and is
            # used directly as the accumulator (no VMEM scratch).
            out_specs=pl.BlockSpec((acc_rows, LANES), lambda p, i: (p, 0)),
        ),
        compiler_params=pltpu.CompilerParams(**cp),
    )(p2, t2)

    # Tiny final cross-lane reduction in XLA.
    return jnp.sum(partials)


def asym_weighted_mse(pred, target, low_thr, high_thr, w_low=0.2, w_high=2.0,
                      *, rows_per_tile=None, nshards=None):
    assert pred.shape == target.shape
    n = pred.size

    cfg = dict(_chip_config())
    if rows_per_tile is not None:
        cfg["rows_per_tile"] = _round_up(max(int(rows_per_tile), SUBLANES), SUBLANES)
    if nshards is not None:
        cfg["nshards"] = max(1, int(nshards))

    p_flat = pred.reshape(-1)
    t_flat = target.reshape(-1)

    main = (n // ALIGN) * ALIGN   # largest (8*128)-aligned prefix
    total = jnp.float32(0.0)

    if main:
        if main == n:
            # Zero-copy reshape to a lane-dense (rows, 128) slab (typical NCHW).
            p2 = p_flat.reshape(main // LANES, LANES)
            t2 = t_flat.reshape(main // LANES, LANES)
        else:
            # Ragged: slice the aligned prefix (avoids a full padded copy of
            # both inputs).
            p2 = jax.lax.slice(p_flat, (0,), (main,)).reshape(main // LANES, LANES)
            t2 = jax.lax.slice(t_flat, (0,), (main,)).reshape(main // LANES, LANES)
        total = total + _weighted_sse_pallas(p2, t2, low_thr, high_thr,
                                             w_low, w_high, cfg)

    if main != n:
        # <1024-element remainder: fold in with a tiny XLA expression.
        pt = p_flat[main:].astype(jnp.float32)
        tt = t_flat[main:].astype(jnp.float32)
        w = jnp.where(tt < low_thr, jnp.float32(w_low), jnp.float32(1.0))
        w = jnp.where(tt >= high_thr, jnp.float32(w_high), w)
        total = total + jnp.sum(w * (pt - tt) ** 2)

    return total / jnp.float32(n)


def _reference(pred, target, low_thr, high_thr, w_low, w_high):
    t = target.astype(jnp.float32)
    p = pred.astype(jnp.float32)
    w = jnp.ones_like(t)
    w = jnp.where(t < low_thr, w_low, w)
    w = jnp.where(t >= high_thr, w_high, w)
    return jnp.mean(w * (p - t) ** 2)


def _check(pred, target, low_thr, high_thr, w_low, w_high, **kw):
    loss = asym_weighted_mse(pred, target, low_thr, high_thr, w_low, w_high, **kw)
    loss = jax.block_until_ready(loss)
    ref = _reference(pred, target, low_thr, high_thr, w_low, w_high)
    assert jnp.allclose(loss, ref, rtol=1e-5, atol=1e-6), (loss, ref)


if __name__ == "__main__":
    key = jax.random.PRNGKey(0)
    ks = jax.random.split(key, 8)

    low_thr, high_thr = 0.3, 0.7
    w_low, w_high = 0.2, 2.0

    # 1) Small NCHW shape; numel % 1024 == 0 -> zero-copy slab, single tile,
    #    no masking code emitted.
    pred = jax.random.normal(ks[0], (2, 4, 16, 16), jnp.float32)
    target = jax.random.uniform(ks[1], (2, 4, 16, 16), jnp.float32)
    _check(pred, target, low_thr, high_thr, w_low, w_high)

    # 2) Ragged numel (1122): aligned-prefix kernel + tiny XLA remainder.
    pred2 = jax.random.normal(ks[2], (2, 3, 17, 11), jnp.float32)
    target2 = jax.random.uniform(ks[3], (2, 3, 17, 11), jnp.float32)
    _check(pred2, target2, low_thr, high_thr, w_low, w_high)

    # 3) Forced tiny tiles: 2 shards over 3 tiles -> clamped duplicate-tile
    #    path; also a ragged XLA remainder.
    pred3 = jax.random.normal(ks[4], (2, 4, 30, 16), jnp.float32)
    target3 = jax.random.uniform(ks[5], (2, 4, 30, 16), jnp.float32)
    _check(pred3, target3, low_thr, high_thr, w_low, w_high,
           rows_per_tile=8, nshards=2)
    #    Forced partial last tile (24 rows, 16-row tiles) -> masked-tail path.
    _check(pred3, target3, low_thr, high_thr, w_low, w_high,
           rows_per_tile=16, nshards=1)

    # 4) Larger slab (rows=1024): exercises the chunked inner fori_loop and
    #    the widened (64,128) accumulator.
    pred4 = jax.random.normal(ks[6], (2, 4, 128, 128), jnp.float32)
    target4 = jax.random.uniform(ks[7], (2, 4, 128, 128), jnp.float32)
    _check(pred4, target4, low_thr, high_thr, w_low, w_high)

    print("KERNEL_OK")
</pallas_src>

<mosaic_0001>
module attributes {stable_mosaic.version = 11 : i64} {
  func.func @_asym_mse_kernel(%arg0: i32, %arg1: i32, %arg2: memref<16x128xf32, #tpu.memory_space<vmem>>, %arg3: memref<16x128xf32, #tpu.memory_space<vmem>>, %arg4: memref<16x128xf32, #tpu.memory_space<vmem>>) attributes {dimension_semantics = [#tpu.dimension_semantics<parallel>, #tpu.dimension_semantics<arbitrary>], iteration_bounds = array<i64: 1, 1>, scalar_prefetch = 0 : i64, scratch_operands = 0 : i64, tpu.core_type = #tpu.core_type<tc>, window_params = [{transform_indices = @transform_0, window_bounds = array<i64: 16, 128>}, {transform_indices = @transform_1, window_bounds = array<i64: 16, 128>}, {transform_indices = @transform_2, window_bounds = array<i64: 16, 128>}]} {
    %c0_i32 = arith.constant 0 : i32
    %0 = arith.cmpi eq, %arg1, %c0_i32 : i32
    %1 = arith.extui %0 : i1 to i32
    %c0_i32_0 = arith.constant 0 : i32
    %2 = arith.cmpi ne, %1, %c0_i32_0 : i32
    scf.if %2 {
      %cst_13 = arith.constant 0.000000e+00 : f32
      %22 = vector.broadcast %cst_13 : f32 to vector<16x128xf32>
      %c0_14 = arith.constant 0 : index
      %c0_15 = arith.constant 0 : index
      %23 = vector.load %arg4[%c0_14, %c0_15] : memref<16x128xf32, #tpu.memory_space<vmem>>, vector<16x128xf32>
      tpu.vector_store %arg4[%c0_14, %c0_15], %22 {strides = array<i32>} : memref<16x128xf32, #tpu.memory_space<vmem>>, vector<16x128xf32>,
    } else {
    }
    %c0 = arith.constant 0 : index
    %c0_1 = arith.constant 0 : index
    %3 = vector.load %arg2[%c0, %c0_1] : memref<16x128xf32, #tpu.memory_space<vmem>>, vector<16x128xf32>
    %c0_2 = arith.constant 0 : index
    %c0_3 = arith.constant 0 : index
    %4 = vector.load %arg3[%c0_2, %c0_3] : memref<16x128xf32, #tpu.memory_space<vmem>>, vector<16x128xf32>
    %cst = arith.constant 3.000000e-01 : f32
    %5 = vector.broadcast %cst : f32 to vector<16x128xf32>
    %6 = arith.cmpf olt, %4, %5 : vector<16x128xf32>
    %cst_4 = arith.constant 2.000000e-01 : f32
    %cst_5 = arith.constant 1.000000e+00 : f32
    %7 = vector.broadcast %cst_4 : f32 to vector<16x128xf32>
    %8 = vector.broadcast %cst_5 : f32 to vector<16x128xf32>
    %9 = arith.select %6, %7, %8 : vector<16x128xi1>, vector<16x128xf32>
    %cst_6 = arith.constant 0.699999988 : f32
    %10 = vector.broadcast %cst_6 : f32 to vector<16x128xf32>
    %11 = arith.cmpf oge, %4, %10 : vector<16x128xf32>
    %cst_7 = arith.constant 2.000000e+00 : f32
    %12 = vector.broadcast %cst_7 : f32 to vector<16x128xf32>
    %13 = arith.select %11, %12, %9 : vector<16x128xi1>, vector<16x128xf32>
    %14 = arith.subf %3, %4 : vector<16x128xf32>
    %15 = arith.mulf %13, %14 : vector<16x128xf32>
    %16 = arith.mulf %15, %14 : vector<16x128xf32>
    %c0_8 = arith.constant 0 : index
    %c0_9 = arith.constant 0 : index
    %17 = vector.load %arg4[%c0_8, %c0_9] : memref<16x128xf32, #tpu.memory_space<vmem>>, vector<16x128xf32>
    %18 = vector.shape_cast %16 : vector<16x128xf32> to vector<1x16x128xf32>
    %cst_10 = arith.constant dense<0.000000e+00> : vector<16x128xf32>
    %19 = vector.multi_reduction <add>, %18, %cst_10 [0] : vector<1x16x128xf32> to vector<16x128xf32>
    %20 = arith.addf %17, %19 : vector<16x128xf32>
    %c0_11 = arith.constant 0 : index
    %c0_12 = arith.constant 0 : index
    %21 = vector.load %arg4[%c0_11, %c0_12] : memref<16x128xf32, #tpu.memory_space<vmem>>, vector<16x128xf32>
    tpu.vector_store %arg4[%c0_11, %c0_12], %20 {strides = array<i32>} : memref<16x128xf32, #tpu.memory_space<vmem>>, vector<16x128xf32>,
    return
  }
  func.func @transform_0(%arg0: i32, %arg1: i32) -> (i32, i32) {
    %c1_i32 = arith.constant 1 : i32
    %0 = arith.muli %arg0, %c1_i32 : i32
    %1 = arith.addi %0, %arg1 : i32
    %c0_i32 = arith.constant 0 : i32
    %c0_i32_0 = arith.constant 0 : i32
    return %1, %c0_i32 : i32, i32
  }
  func.func @transform_1(%arg0: i32, %arg1: i32) -> (i32, i32) {
    %c1_i32 = arith.constant 1 : i32
    %0 = arith.muli %arg0, %c1_i32 : i32
    %1 = arith.addi %0, %arg1 : i32
    %c0_i32 = arith.constant 0 : i32
    %c0_i32_0 = arith.constant 0 : i32
    return %1, %c0_i32 : i32, i32
  }
  func.func @transform_2(%arg0: i32, %arg1: i32) -> (i32, i32) {
    %c0_i32 = arith.constant 0 : i32
    %c0_i32_0 = arith.constant 0 : i32
    return %arg0, %c0_i32 : i32, i32
  }
}

</mosaic_0001>

<bundles_post_ra>
// kernel: tpu_custom_call.1
= control target key start
LH: loop header
LB: loop body
LE: loop exit
PB: predicated region body
PF: predicated region fallthrough
CT: control target
= control target key end

     0   :  { %7 = vsyncpa [#allocation3], 0  ;;  %s214_s0 = inlined_call_operand.hbm [shape: f32[16,128], index: 0, kind: input, shape index: {}]   ;;  %s215_s1 = inlined_call_operand.hbm [shape: f32[16,128], index: 1, kind: input, shape index: {}]   ;;  %s216_s2 = inlined_call_operand.hbm [shape: f32[16,128], index: 2, kind: output, shape index: {}]  }
   0x1   :  { %8 = vsyncpa [#allocation6], 0 }
   0x2   :  { %9 = vsyncpa [#allocation4], 0  ;;  %s175_s9 = smov [#allocation2]  }
   0x3   :  { %s19_s10 = sshll.u32 %s175_s9, 4  ;;  %s20_s10 = int_to_ptr.vmem [resolvable:$true] %s19_s10 }
   0x4   :  { %s117_s11 = scalar_lea.vmem %s20_s10, 256  ;;  %p122_p1 = scmp.lt.s32.totalorder %s20_s10, %s20_s10 }
   0x5   :  { %p118_p0 = scmp.ne.s32.totalorder %s20_s10, %s117_s11  ;;  %p123_p2 = scmp.lt.s32.totalorder %s117_s11, %s117_s11 }
   0x7   :  { %p124_p3 = por %p123_p2, %p122_p1 }
   0x9   :  { %p125_p4 = pnand %p124_p3, %p118_p0 }
   0xb   :  { %128 = shalt.err (!%p125_p4)
}
   0xc   :  { %s176_s12 = smov 128   ;;  %s177_s13 = smov 8  }
   0xd   :  { %25 = dma.hbm_to_vmem [thread:$0]  %s214_s0, 256, %s20_s10, [#allocation3], %s176_s12, %s176_s12, %s177_s13  }
   0xe   :  { %s178_s16 = smov [#allocation5]  }
   0xf   :  { %s35_s17 = sshll.u32 %s178_s16, 4  ;;  %s36_s17 = int_to_ptr.vmem [resolvable:$true] %s35_s17 }
  0x10   :  { %s137_s18 = scalar_lea.vmem %s36_s17, 256  ;;  %p142_p6 = scmp.lt.s32.totalorder %s36_s17, %s36_s17 }
  0x11   :  { %p138_p5 = scmp.ne.s32.totalorder %s36_s17, %s137_s18  ;;  %p143_p7 = scmp.lt.s32.totalorder %s137_s18, %s137_s18 }
  0x13   :  { %p144_p8 = por %p143_p7, %p142_p6 }
  0x15   :  { %p145_p9 = pnand %p144_p8, %p138_p5 }
  0x17   :  { %148 = shalt.err (!%p145_p9)
}
  0x18   :  { %41 = dma.hbm_to_vmem [thread:$0]  %s215_s1, 256, %s36_s17, [#allocation6], %s176_s12, %s176_s12, %s177_s13  }
  0x19   :  { %169 = dma.done.wait [#allocation3], 256  }
  0x1a   :  { %170 = vsyncadd [#allocation3], 4294967040 }
  0x1b   :  { %171 = dma.done.wait [#allocation6], 256  }
  0x1c   :  { %172 = vsyncadd [#allocation6], 4294967040  ;;  %v58_v0 = vld [vmem:[#allocation2] sm:$0xff]  ;;  %v60_v1 = vld [vmem:[#allocation5] sm:$0xff]  ;;  %v179_v5 = vmov 1.0   ;;  %s180_s0 = smov [#allocation7]  }
  0x1d   :  { %v59_v2 = vld [vmem:[#allocation2 + $0x8] sm:$0xff]  ;;  %vm62_vm0 = vcmp.lt.f32.partialorder %v60_v1, 0.3  ;;  %vm66_vm1 = vcmp.ge.f32.partialorder %v60_v1, 0.7  ;;  %v70_v3 = vsub.f32 %v58_v0, %v60_v1  ;;  %v61_v4 = vld [vmem:[#allocation5 + $0x8] sm:$0xff] }
  0x1e   :  { %v64_v6 = vsel %vm62_vm0, 0.2, %v179_v5  ;;  %vm63_vm2 = vcmp.lt.f32.partialorder %v61_v4, 0.3  ;;  %vm67_vm3 = vcmp.ge.f32.partialorder %v61_v4, 0.7  ;;  %v71_v7 = vsub.f32 %v59_v2, %v61_v4 }
  0x1f   :  { %v68_v8 = vsel %vm66_vm1, 2.0, %v64_v6  ;;  %v65_v9 = vsel %vm63_vm2, 0.2, %v179_v5  ;;  %s89_s1 = sshll.u32 %s180_s0, 4  ;;  %s90_s1 = int_to_ptr.vmem [resolvable:$true] %s89_s1 }
  0x20   :  { %v72_v10 = vmul.f32 %v70_v3, %v68_v8  ;;  %v69_v11 = vsel %vm67_vm3, 2.0, %v65_v9  ;;  %s149_s21 = scalar_lea.vmem %s90_s1, 256  ;;  %p154_p11 = scmp.lt.s32.totalorder %s90_s1, %s90_s1 }
  0x21   :  { %v73_v12 = vmul.f32 %v71_v7, %v69_v11  ;;  %p150_p10 = scmp.ne.s32.totalorder %s90_s1, %s149_s21  ;;  %p155_p12 = scmp.lt.s32.totalorder %s149_s21, %s149_s21 }
  0x22   :  { %v74_v13 = vmul.f32 %v72_v10, %v70_v3 }
  0x23   :  { %v75_v14 = vmul.f32 %v73_v12, %v71_v7  ;;  %p156_p13 = por %p155_p12, %p154_p11 }
  0x24   :  { %82 = vst [vmem:[#allocation7] sm:$0xff] %v74_v13 }
  0x25   :  { %83 = vst [vmem:[#allocation7 + $0x8] sm:$0xff] %v75_v14  ;;  %p157_p0 = pnand %p156_p13, %p150_p10 }
  0x27   :  { %160 = shalt.err (!%p157_p0)
}
  0x28   :  { %95 = dma.vmem_to_hbm [thread:$0]  %s90_s1, 256, %s216_s2, [#allocation4], %s176_s12, %s176_s12, %s177_s13  }
  0x29   :  { %173 = dma.done.wait [#allocation4], 256  }
  0x2a   :  { %174 = vsyncadd [#allocation4], 4294967040 }
  0x2b   :  { %99 = vsyncpa [#allocation3], 1 }
  0x2c   :  { %100 = vsyncpa [#allocation6], 1 }
  0x2d   :  { %101 = vsyncpa [#allocation4], 1 }

</bundles_post_ra>
